<compile_context>
chip_gen: v6e
topology: v6e:2x2x1
jax: 0.10.0
libtpu: 0.0.40
codegen_flags: <defaults>
</compile_context>

<pallas_src>
import functools

import jax
import jax.numpy as jnp
from jax.experimental import pallas as pl
from jax.experimental.pallas import tpu as pltpu


_TM_MAX = 1024                            # row tile (output node rows)
_TK_MAX = 2048                            # reduction tile (neighbor nodes)
_RESIDENT_XW_BYTES = 16 * 1024 * 1024     # VMEM-residency budget for XW / Gs
_AGG_VMEM_LIMIT = 48 * 1024 * 1024        # safe under v7x's 64 MiB per TC


def _round_up(x, m):
    return ((x + m - 1) // m) * m


def _pad2d(x, rows, cols):
    return jnp.pad(x, ((0, rows - x.shape[0]), (0, cols - x.shape[1])))


# --------------------------------------------------------------------------
# Kernel 1: feature transform  XW1s = D^-1/2 (X @ W1)   (computed once)
# --------------------------------------------------------------------------
def _xw_kernel(x_ref, w_ref, dinv_ref, o_ref):
    xw = jnp.dot(x_ref[...], w_ref[...], preferred_element_type=jnp.float32)
    # Fold the column-side D^-1/2 of A_hat into this operand once, so the
    # streamed adjacency can stay as exact int8 edge counts.
    o_ref[...] = (xw * dinv_ref[...]).astype(o_ref.dtype)


def _feature_transform(x, w, dinv, *, tm):
    n_pad, f_in = x.shape
    f_out = w.shape[1]
    return pl.pallas_call(
        _xw_kernel,
        out_shape=jax.ShapeDtypeStruct((n_pad, f_out), jnp.bfloat16),
        grid=(n_pad // tm,),
        in_specs=[
            pl.BlockSpec((tm, f_in), lambda i: (i, 0)),
            pl.BlockSpec((f_in, f_out), lambda i: (0, 0)),
            pl.BlockSpec((tm, 1), lambda i: (i, 0)),
        ],
        out_specs=pl.BlockSpec((tm, f_out), lambda i: (i, 0)),
        compiler_params=pltpu.CompilerParams(
            dimension_semantics=("parallel",),
            vmem_limit_bytes=32 * 1024 * 1024,
        ),
    )(x, w, dinv)


# --------------------------------------------------------------------------
# Kernel 2: neighborhood aggregation  acc = (A + I) @ XWs   (int8 stream,
#           f32 VMEM accumulator, occupancy compute-skip)
#   epilogue: fused layer-1:  o = d_i^-1/2 * (relu(d_i^-1/2 * acc + b1) @ W2)
#             plain layer-2:  o = d_i^-1/2 * acc + b2
# --------------------------------------------------------------------------
def _agg_kernel(occ_ref, *refs, tk, fuse_relu_w2, resident_xw):
    if fuse_relu_w2:
        a_ref, xw_ref, dinv_ref, b_ref, w2_ref, o_ref, acc_ref = refs
    else:
        a_ref, xw_ref, dinv_ref, b_ref, o_ref, acc_ref = refs
        w2_ref = None

    i = pl.program_id(0)
    k = pl.program_id(1)

    @pl.when(k == 0)
    def _():
        acc_ref[...] = jnp.zeros_like(acc_ref)

    # Skip the MXU work for all-zero adjacency blocks (prefetched occupancy
    # table).  TODO(synk): data-dependent index_map over nonzero K-blocks only,
    # so the A-tile DMA is skipped as well.
    @pl.when(occ_ref[i, k] != 0)
    def _():
        # int8 counts -> bf16 on the VPU (exact for small integer counts)
        a = a_ref[...].astype(jnp.float32).astype(jnp.bfloat16)
        if resident_xw:
            start = pl.multiple_of(k * tk, 128)
            xw = xw_ref[pl.ds(start, tk), :]
        else:
            xw = xw_ref[...]
        acc_ref[...] += jnp.dot(a, xw, preferred_element_type=jnp.float32)

    @pl.when(k == pl.num_programs(1) - 1)
    def _():
        dinv = dinv_ref[...]                         # (tm, 1) f32, d_i^-1/2
        h = acc_ref[...] * dinv + b_ref[...]         # restore row-side normalization
        if fuse_relu_w2:
            h = jnp.maximum(h, 0.0)                  # ReLU
            h = jnp.dot(h.astype(w2_ref.dtype), w2_ref[...],
                        preferred_element_type=jnp.float32)
            h = h * dinv                             # pre-scale rows for layer-2 agg
        o_ref[...] = h.astype(o_ref.dtype)


def _aggregate(occ, a_int8, xw, dinv, b, w2=None, *,
               tm, tk, fuse_relu_w2, out_dtype, resident_xw):
    n_pad = a_int8.shape[0]
    f_mid = xw.shape[1]
    f_out = w2.shape[1] if fuse_relu_w2 else f_mid

    kernel = functools.partial(
        _agg_kernel, tk=tk, fuse_relu_w2=fuse_relu_w2, resident_xw=resident_xw)

    if resident_xw:
        # Fully VMEM-resident second operand: fetched once, sliced in-kernel.
        xw_spec = pl.BlockSpec((n_pad, f_mid), lambda i, k, occ: (0, 0))
    else:
        xw_spec = pl.BlockSpec((tk, f_mid), lambda i, k, occ: (k, 0))

    in_specs = [
        pl.BlockSpec((tm, tk), lambda i, k, occ: (i, k)),     # int8 A counts (streamed)
        xw_spec,                                              # XWs / Gs
        pl.BlockSpec((tm, 1), lambda i, k, occ: (i, 0)),      # d^-1/2 row block
        pl.BlockSpec((1, f_mid), lambda i, k, occ: (0, 0)),   # bias
    ]
    args = [a_int8, xw, dinv, b.reshape(1, f_mid).astype(jnp.float32)]
    if fuse_relu_w2:
        in_specs.append(pl.BlockSpec((f_mid, f_out), lambda i, k, occ: (0, 0)))
        args.append(w2)

    return pl.pallas_call(
        kernel,
        out_shape=jax.ShapeDtypeStruct((n_pad, f_out), out_dtype),
        grid_spec=pltpu.PrefetchScalarGridSpec(
            num_scalar_prefetch=1,
            grid=(n_pad // tm, n_pad // tk),
            in_specs=in_specs,
            out_specs=pl.BlockSpec((tm, f_out), lambda i, k, occ: (i, 0)),
            scratch_shapes=[pltpu.VMEM((tm, f_mid), jnp.float32)],
        ),
        compiler_params=pltpu.CompilerParams(
            dimension_semantics=("parallel", "arbitrary"),
            vmem_limit_bytes=_AGG_VMEM_LIMIT,
        ),
    )(occ, *args)


# --------------------------------------------------------------------------
# Graph preprocessing (glue, plain JAX)
# --------------------------------------------------------------------------
def build_graph_operands(edge_index, num_nodes):
    """Raw (A + I) edge counts and D^-1/2 (normalization factored out)."""
    src, dst = edge_index[0], edge_index[1]
    adj = jnp.zeros((num_nodes, num_nodes), jnp.float32)
    # scatter-ADD so duplicate edges accumulate (matches PyG message passing)
    adj = adj.at[dst, src].add(1.0)
    # add self-loops only where missing (PyG add_remaining_self_loops)
    diag = jnp.diagonal(adj)
    adj = adj + jnp.diag(jnp.where(diag == 0, 1.0, 0.0))
    deg = adj.sum(axis=1)
    dinv = jnp.where(deg > 0, jax.lax.rsqrt(deg), 0.0)
    return adj, dinv   # adj = integer edge counts (incl. self loops)


# --------------------------------------------------------------------------
# Full forward (eval mode: dropout = identity)
# --------------------------------------------------------------------------
def gcn_forward(x, edge_index, params):
    n, f_in = x.shape
    hidden = params["w1"].shape[1]
    f_out = params["w2"].shape[1]

    # ---- tile / padding geometry ------------------------------------------
    n128 = _round_up(n, 128)
    tm = min(_TM_MAX, n128)
    n_pad = _round_up(n128, tm)
    tk = min(_TK_MAX, n_pad)
    n_pad = _round_up(n_pad, tk)            # divisible by both tm and tk
    f_in_p = _round_up(f_in, 128)
    hid_p = _round_up(hidden, 128)
    out_p = _round_up(f_out, 128)

    # ---- graph operands -----------------------------------------------------
    counts, dinv = build_graph_operands(edge_index, n)
    # int8 edge counts (exact) halve the dominant HBM stream vs bf16 A_hat.
    # NOTE: assumes per-entry edge multiplicity (incl. self loop) <= 127.
    a_int8 = _pad2d(counts, n_pad, n_pad).astype(jnp.int8)
    dinv_p = jnp.zeros((n_pad, 1), jnp.float32).at[:n, 0].set(dinv)

    # per-(row-tile, k-tile) block occupancy table for the compute-skip path
    occ = (
        a_int8.reshape(n_pad // tm, tm, n_pad // tk, tk) != 0
    ).any(axis=(1, 3)).astype(jnp.int32)

    # ---- parameters ----------------------------------------------------------
    x_p = _pad2d(x, n_pad, f_in_p).astype(jnp.bfloat16)
    w1_p = _pad2d(params["w1"], f_in_p, hid_p).astype(jnp.bfloat16)
    b1_p = jnp.zeros((hid_p,), jnp.float32).at[:hidden].set(params["b1"])
    w2_p = _pad2d(params["w2"], hid_p, out_p).astype(jnp.bfloat16)
    b2_p = jnp.zeros((out_p,), jnp.float32).at[:f_out].set(params["b2"])

    # keep the dense second operand fully VMEM-resident when it fits the budget
    resident1 = n_pad * hid_p * 2 <= _RESIDENT_XW_BYTES
    resident2 = n_pad * out_p * 2 <= _RESIDENT_XW_BYTES

    # (eval mode: dropout(p=0.02) is the identity)
    # TODO(synk): training-mode dropout via pltpu.prng_seed / prng_random_bits.

    # layer-1 feature transform, with the column-side D^-1/2 folded in:
    #   XW1s = D^-1/2 (X @ W1)                                  [n_pad, hid_p] bf16
    xw1 = _feature_transform(x_p, w1_p, dinv_p, tm=tm)

    # layer-1 aggregation fused with ReLU + layer-2 transform + next-layer scale:
    #   Gs = D^-1/2 [ relu(D^-1/2 (A+I) XW1s + b1) @ W2 ]       [n_pad, out_p] bf16
    g = _aggregate(occ, a_int8, xw1, dinv_p, b1_p, w2_p, tm=tm, tk=tk,
                   fuse_relu_w2=True, out_dtype=jnp.bfloat16,
                   resident_xw=resident1)

    # layer-2 aggregation:  out = D^-1/2 (A+I) Gs + b2          [n_pad, out_p] f32
    out = _aggregate(occ, a_int8, g, dinv_p, b2_p, tm=tm, tk=tk,
                     fuse_relu_w2=False, out_dtype=jnp.float32,
                     resident_xw=resident2)

    return out[:n, :f_out]


def init_params(key, in_channels, hidden_channels, out_channels):
    k1, k2 = jax.random.split(key)

    def glorot(k, fan_in, fan_out):
        limit = jnp.sqrt(6.0 / (fan_in + fan_out))
        return jax.random.uniform(
            k, (fan_in, fan_out), jnp.float32, -limit, limit)

    return {
        "w1": glorot(k1, in_channels, hidden_channels),
        "b1": jnp.zeros((hidden_channels,), jnp.float32),
        "w2": glorot(k2, hidden_channels, out_channels),
        "b2": jnp.zeros((out_channels,), jnp.float32),
    }


if __name__ == "__main__":
    key = jax.random.PRNGKey(0)
    k_x, k_e, k_p = jax.random.split(key, 3)

    num_nodes = 16
    in_channels = 8
    hidden_channels = 32
    out_channels = 4
    num_edges = 24

    # Node features
    x = jax.random.normal(k_x, (num_nodes, in_channels), jnp.float32)

    # Random undirected edges (both directions included)
    src = jax.random.randint(k_e, (num_edges,), 0, num_nodes)
    dst = jax.random.randint(jax.random.fold_in(k_e, 1), (num_edges,), 0, num_nodes)
    edge_index = jnp.stack(
        [jnp.concatenate([src, dst]), jnp.concatenate([dst, src])], axis=0
    ).astype(jnp.int32)

    params = init_params(k_p, in_channels, hidden_channels, out_channels)

    out = gcn_forward(x, edge_index, params)
    out = jax.block_until_ready(out)

    assert out.shape == (num_nodes, out_channels)
    assert out.dtype == jnp.float32
    assert bool(jnp.all(jnp.isfinite(out)))
    print("KERNEL_OK")
</pallas_src>

<mosaic_0001>
module attributes {stable_mosaic.version = 11 : i64} {
  func.func @_xw_kernel(%arg0: i32, %arg1: memref<128x128xbf16, #tpu.memory_space<vmem>>, %arg2: memref<128x128xbf16, #tpu.memory_space<vmem>>, %arg3: memref<128x1xf32, #tpu.memory_space<vmem>>, %arg4: memref<128x128xbf16, #tpu.memory_space<vmem>>) attributes {dimension_semantics = [#tpu.dimension_semantics<parallel>], iteration_bounds = array<i64: 1>, scalar_prefetch = 0 : i64, scratch_operands = 0 : i64, tpu.core_type = #tpu.core_type<tc>, window_params = [{transform_indices = @transform_0, window_bounds = array<i64: 128, 128>}, {pipeline_mode = #tpu.pipeline_mode<synchronous>, transform_indices = @transform_1, window_bounds = array<i64: 128, 128>}, {transform_indices = @transform_2, window_bounds = array<i64: 128, 1>}, {transform_indices = @transform_3, window_bounds = array<i64: 128, 128>}]} {
    %c0 = arith.constant 0 : index
    %c0_0 = arith.constant 0 : index
    %0 = vector.load %arg1[%c0, %c0_0] : memref<128x128xbf16, #tpu.memory_space<vmem>>, vector<128x128xbf16>
    %c0_1 = arith.constant 0 : index
    %c0_2 = arith.constant 0 : index
    %1 = vector.load %arg2[%c0_1, %c0_2] : memref<128x128xbf16, #tpu.memory_space<vmem>>, vector<128x128xbf16>
    %cst = arith.constant dense<0.000000e+00> : vector<128x128xf32>
    %2 = tpu.matmul %0, %1, %cst {dimension_numbers = #tpu.dot_dimension_numbers<[1], [0], [0], [1], [0, 0, 1, 1], [], []>} : vector<128x128xbf16>, vector<128x128xbf16>, vector<128x128xf32> -> vector<128x128xf32>
    %c0_3 = arith.constant 0 : index
    %c0_4 = arith.constant 0 : index
    %3 = vector.load %arg3[%c0_3, %c0_4] : memref<128x1xf32, #tpu.memory_space<vmem>>, vector<128x1xf32>
    %4 = vector.broadcast %3 : vector<128x1xf32> to vector<128x128xf32>
    %5 = arith.mulf %2, %4 : vector<128x128xf32>
    %6 = arith.truncf %5 : vector<128x128xf32> to vector<128x128xbf16>
    %c0_5 = arith.constant 0 : index
    %c0_6 = arith.constant 0 : index
    %7 = vector.load %arg4[%c0_5, %c0_6] : memref<128x128xbf16, #tpu.memory_space<vmem>>, vector<128x128xbf16>
    tpu.vector_store %arg4[%c0_5, %c0_6], %6 {strides = array<i32>} : memref<128x128xbf16, #tpu.memory_space<vmem>>, vector<128x128xbf16>,
    return
  }
  func.func @transform_0(%arg0: i32) -> (i32, i32) {
    %c0_i32 = arith.constant 0 : i32
    %c0_i32_0 = arith.constant 0 : i32
    return %arg0, %c0_i32 : i32, i32
  }
  func.func @transform_1(%arg0: i32) -> (i32, i32) {
    %c0_i32 = arith.constant 0 : i32
    %c0_i32_0 = arith.constant 0 : i32
    %c0_i32_1 = arith.constant 0 : i32
    return %c0_i32, %c0_i32_0 : i32, i32
  }
  func.func @transform_2(%arg0: i32) -> (i32, i32) {
    %c0_i32 = arith.constant 0 : i32
    %c0_i32_0 = arith.constant 0 : i32
    return %arg0, %c0_i32 : i32, i32
  }
  func.func @transform_3(%arg0: i32) -> (i32, i32) {
    %c0_i32 = arith.constant 0 : i32
    %c0_i32_0 = arith.constant 0 : i32
    return %arg0, %c0_i32 : i32, i32
  }
}

</mosaic_0001>

<bundles_post_ra>
// kernel: tpu_custom_call.1
= control target key start
LH: loop header
LB: loop body
LE: loop exit
PB: predicated region body
PF: predicated region fallthrough
CT: control target
= control target key end

     0   :  { %v652_v2 = vmov 0   ;;  %s775_s0 = inlined_call_operand.vmem [shape: bf16[128,128], index: 0, kind: input, shape index: {}]   ;;  %s776_s1 = inlined_call_operand.vmem [shape: bf16[128,128], index: 1, kind: input, shape index: {}]   ;;  %s777_s2 = inlined_call_operand.vmem [shape: f32[128,1], index: 2, kind: input, shape index: {}]   ;;  %s778_s3 = inlined_call_operand.hbm [shape: bf16[128,128], index: 3, kind: output, shape index: {}]  }
   0x1   :  { %v614_v0 = vld [vmem:[%s776_s1 + $0x38] sm:$0xff]   ;;  %v615_v1 = vld [vmem:[%s776_s1 + $0x30] sm:$0xff]   ;;  %613 = vset.pattern.permute.xlu1 %v652_v2  ;;  %612 = vset.pattern.permute.xlu0 %v652_v2  ;;  %v616_v3 = vld [vmem:[%s776_s1 + $0x28] sm:$0xff]  }
   0x2   :  { %560 = vmatprep.subr.bf16.mxu0 %v614_v0  ;;  %592 = vmatprep.subr.bf16.mxu1 %v614_v0  ;;  %v617_v4 = vld [vmem:[%s776_s1 + $0x20] sm:$0xff]   ;;  %v618_v7 = vld [vmem:[%s776_s1 + $0x18] sm:$0xff]   ;;  %v619_v8 = vld [vmem:[%s776_s1 + $0x10] sm:$0xff]  }
   0x3   :  { %561 = vmatpush3.bf16.msra.mxu0 %v614_v0  ;;  %600 = vmatpush3.bf16.msra.mxu1 %v614_v0  ;;  %v622_v5 = vld [vmem:[%s775_s0] sm:$0xff]   ;;  %v243_v9 = vld [vmem:[%s777_s2 + $0x10] sm:$0xff]  ;;  %v244_v11 = vld [vmem:[%s777_s2 + $0x18] sm:$0xff] }
   0x4   :  { %562 = vmatprep.subr.bf16.mxu0 %v615_v1  ;;  %593 = vmatprep.subr.bf16.mxu1 %v615_v1  ;;  %v623_v6 = vld [vmem:[%s775_s0 + $0x20] sm:$0xff]   ;;  %v242_v12 = vld [vmem:[%s777_s2 + $0x8] sm:$0xff] }
   0x5   :  { %576 = vmatprep.mubr.bf16.mxu0 %v622_v5  ;;  %584 = vmatprep.mubr.bf16.mxu1 %v623_v6  ;;  %v241_v10 = vld [vmem:[%s777_s2] sm:$0xff]  ;;  %v620_v13 = vld [vmem:[%s776_s1 + $0x8] sm:$0xff]  }
   0x6   :  { %269 = vperm.xlu1 %613, %v243_v9   ;;  %259 = vperm.xlu0 %612, %v241_v10  }
   0x7   :  { %563 = vmatpush3.bf16.msra.mxu0 %v615_v1  ;;  %601 = vmatpush3.bf16.msra.mxu1 %v615_v1 }
   0x8   :  { %564 = vmatprep.subr.bf16.mxu0 %v616_v3  ;;  %594 = vmatprep.subr.bf16.mxu1 %v616_v3 }
   0xa   :  { %274 = vperm.xlu1 %613, %v244_v11   ;;  %264 = vperm.xlu0 %612, %v242_v12  }
   0xb   :  { %565 = vmatpush3.bf16.msra.mxu0 %v616_v3  ;;  %602 = vmatpush3.bf16.msra.mxu1 %v616_v3 }
   0xc   :  { %566 = vmatprep.subr.bf16.mxu0 %v617_v4  ;;  %595 = vmatprep.subr.bf16.mxu1 %v617_v4 }
   0xf   :  { %567 = vmatpush3.bf16.msra.mxu0 %v617_v4  ;;  %603 = vmatpush3.bf16.msra.mxu1 %v617_v4 }
  0x10   :  { %568 = vmatprep.subr.bf16.mxu0 %v618_v7  ;;  %596 = vmatprep.subr.bf16.mxu1 %v618_v7 }
  0x13   :  { %569 = vmatpush3.bf16.msra.mxu0 %v618_v7  ;;  %604 = vmatpush3.bf16.msra.mxu1 %v618_v7 }
  0x14   :  { %570 = vmatprep.subr.bf16.mxu0 %v619_v8  ;;  %597 = vmatprep.subr.bf16.mxu1 %v619_v8 }
  0x15   :  { %8 = vsyncpa [#allocation3], 0  ;;  %v246_v14 = vld [vmem:[%s777_s2 + $0x28] sm:$0xff]  ;;  %v245_v15 = vld [vmem:[%s777_s2 + $0x20] sm:$0xff] }
  0x16   :  { %v621_v16 = vld [vmem:[%s776_s1] sm:$0xff]   ;;  %284 = vperm.xlu1 %613, %v246_v14   ;;  %279 = vperm.xlu0 %612, %v245_v15   ;;  %v248_v17 = vld [vmem:[%s777_s2 + $0x38] sm:$0xff]  ;;  %v247_v18 = vld [vmem:[%s777_s2 + $0x30] sm:$0xff] }
  0x17   :  { %571 = vmatpush3.bf16.msra.mxu0 %v619_v8  ;;  %605 = vmatpush3.bf16.msra.mxu1 %v619_v8  ;;  %v624_v19 = vld [vmem:[%s775_s0 + $0x8] sm:$0xff]   ;;  %v249_v22 = vld [vmem:[%s777_s2 + $0x40] sm:$0xff]  ;;  %v626_v23 = vld [vmem:[%s775_s0 + $0x10] sm:$0xff]  }
  0x18   :  { %572 = vmatprep.subr.bf16.mxu0 %v620_v13  ;;  %598 = vmatprep.subr.bf16.mxu1 %v620_v13  ;;  %v625_v20 = vld [vmem:[%s775_s0 + $0x28] sm:$0xff]   ;;  %v627_v24 = vld [vmem:[%s775_s0 + $0x30] sm:$0xff]   ;;  %v252_v25 = vld [vmem:[%s777_s2 + $0x58] sm:$0xff] }
  0x19   :  { %v250_v21 = vld [vmem:[%s777_s2 + $0x48] sm:$0xff]  ;;  %v251_v26 = vld [vmem:[%s777_s2 + $0x50] sm:$0xff]  ;;  %v628_v27 = vld [vmem:[%s775_s0 + $0x18] sm:$0xff]  }
  0x1a   :  { %294 = vperm.xlu1 %613, %v248_v17   ;;  %289 = vperm.xlu0 %612, %v247_v18   ;;  %v629_v28 = vld [vmem:[%s775_s0 + $0x38] sm:$0xff]   ;;  %v254_v29 = vld [vmem:[%s777_s2 + $0x68] sm:$0xff]  ;;  %v253_v30 = vld [vmem:[%s777_s2 + $0x60] sm:$0xff]  ;;  %s653_s0 = smov [#allocation2]  }
  0x1b   :  { %573 = vmatpush3.bf16.msra.mxu0 %v620_v13  ;;  %606 = vmatpush3.bf16.msra.mxu1 %v620_v13  ;;  %v256_v31 = vld [vmem:[%s777_s2 + $0x78] sm:$0xff]  ;;  %v255_v32 = vld [vmem:[%s777_s2 + $0x70] sm:$0xff]  ;;  %s438_s2 = sshll.u32 %s653_s0, 4  ;;  %s439_s2 = int_to_ptr.vmem [resolvable:$true] %s438_s2 }
  0x1c   :  { %574 = vmatprep.subr.bf16.mxu0 %v621_v16  ;;  %599 = vmatprep.subr.bf16.mxu1 %v621_v16  ;;  %s630_s21 = scalar_lea.vmem %s439_s2, 1024  ;;  %p635_p1 = scmp.lt.s32.totalorder %s439_s2, %s439_s2 }
  0x1d   :  { %p631_p0 = scmp.ne.s32.totalorder %s439_s2, %s630_s21  ;;  %p636_p2 = scmp.lt.s32.totalorder %s630_s21, %s630_s21 }
  0x1e   :  { %304 = vperm.xlu1 %613, %v250_v21   ;;  %299 = vperm.xlu0 %612, %v249_v22  }
  0x1f   :  { %575 = vmatpush3.bf16.msra.mxu0 %v621_v16  ;;  %607 = vmatpush3.bf16.msra.mxu1 %v621_v16  ;;  %p637_p3 = por %p636_p2, %p635_p1 }
  0x21   :  { %p638_p4 = pnand %p637_p3, %p631_p0 }
  0x22   :  { %577 = vmatmul.mubr.bf16.vlgmr.msra.gmra.mxu0 %v624_v19  ;;  %585 = vmatmul.mubr.bf16.vlgmr.msra.gmra.mxu1 %v625_v20 }
  0x23   :  { %580 = vmatprep.mubr.bf16.mxu0 %v626_v23  ;;  %588 = vmatprep.mubr.bf16.mxu1 %v627_v24 }
  0x24   :  { %314 = vperm.xlu1 %613, %v252_v25   ;;  %309 = vperm.xlu0 %612, %v251_v26  }
  0x28   :  { %324 = vperm.xlu1 %613, %v254_v29   ;;  %319 = vperm.xlu0 %612, %v253_v30  }
  0x2a   :  { %581 = vmatmul.mubr.bf16.gmra.mxu0 %v628_v27  ;;  %589 = vmatmul.mubr.bf16.gmra.mxu1 %v629_v28 }
  0x2c   :  { %334 = vperm.xlu1 %613, %v256_v31   ;;  %329 = vperm.xlu0 %612, %v255_v32  }
  0x81   :  { %v270_v33 = vpop.permute.xlu1 %269  ;;  %v260_v34 = vpop.permute.xlu0 %259 }
  0x85   :  { %v275_v35 = vpop.permute.xlu1 %274  ;;  %v265_v36 = vpop.permute.xlu0 %264 }
  0x91   :  { %v285_v37 = vpop.permute.xlu1 %284  ;;  %v280_v38 = vpop.permute.xlu0 %279 }
  0x95   :  { %v295_v39 = vpop.permute.xlu1 %294  ;;  %v290_v40 = vpop.permute.xlu0 %289 }
  0x99   :  { %v305_v41 = vpop.permute.xlu1 %304  ;;  %v300_v42 = vpop.permute.xlu0 %299 }
  0x9f   :  { %v315_v43 = vpop.permute.xlu1 %314  ;;  %v310_v44 = vpop.permute.xlu0 %309 }
  0xa3   :  { %v325_v51 = vpop.permute.xlu1 %324  ;;  %v320_v52 = vpop.permute.xlu0 %319 }
  0xa7   :  { %v335_v7 = vpop.permute.xlu1 %334  ;;  %v330_v8 = vpop.permute.xlu0 %329 }
  0xe2   :  { %v578_v45 = vpop.f32.mrf.mxu0  ;;  %v586_v46 = vpop.f32.mrf.mxu1 }
  0xe3   :  { %v339_v53 = vmul.f32 %v578_v45, %v270_v33  ;;  %v347_v54 = vmul.f32 %v586_v46, %v310_v44 }
  0xe4   :  { %v178_v47 = vpop.f32.mrf.mxu0  ;;  %v210_v48 = vpop.f32.mrf.mxu1 }
  0xe5   :  { %v337_v57 = vmul.f32 %v260_v34, %v178_v47  ;;  %v345_v58 = vmul.f32 %v300_v42, %v210_v48 }
  0xe6   :  { %v579_v49 = vpop.f32.mrf.mxu0  ;;  %v587_v50 = vpop.f32.mrf.mxu1 }
  0xe7   :  { %v340_v55 = vmul.f32 %v579_v49, %v275_v35  ;;  %v348_v56 = vmul.f32 %v587_v50, %v315_v43 }
  0xe8   :  { %v181_v59 = vpop.f32.mrf.mxu0  ;;  %v213_v60 = vpop.f32.mrf.mxu1 }
  0xe9   :  { %v505_v61 = vpack.c.bf16 %v340_v55, %v339_v53  ;;  %v525_v62 = vpack.c.bf16 %v348_v56, %v347_v54  ;;  %v338_v63 = vmul.f32 %v265_v36, %v181_v59  ;;  %v346_v0 = vmul.f32 %v305_v41, %v213_v60 }
  0xea   :  { %v582_v1 = vpop.f32.mrf.mxu0  ;;  %v590_v2 = vpop.f32.mrf.mxu1 }
  0xeb   :  { %537 = vst [vmem:[#allocation2 + $0x8] sm:$0xff] %v505_v61   ;;  %541 = vst [vmem:[#allocation2 + $0x28] sm:$0xff] %v525_v62   ;;  %v500_v3 = vpack.c.bf16 %v338_v63, %v337_v57  ;;  %v520_v4 = vpack.c.bf16 %v346_v0, %v345_v58  ;;  %v343_v11 = vmul.f32 %v582_v1, %v290_v40 }
  0xec   :  { %v194_v5 = vpop.f32.mrf.mxu0  ;;  %v226_v6 = vpop.f32.mrf.mxu1  ;;  %v351_v12 = vmul.f32 %v590_v2, %v330_v8 }
  0xed   :  { %501 = vst [vmem:[#allocation2] sm:$0xff] %v500_v3   ;;  %540 = vst [vmem:[#allocation2 + $0x20] sm:$0xff] %v520_v4   ;;  %v341_v15 = vmul.f32 %v280_v38, %v194_v5  ;;  %v349_v16 = vmul.f32 %v320_v52, %v226_v6 }
  0xee   :  { %v583_v9 = vpop.f32.mrf.mxu0  ;;  %v591_v10 = vpop.f32.mrf.mxu1 }
  0xef   :  { %v344_v13 = vmul.f32 %v583_v9, %v295_v39  ;;  %v352_v14 = vmul.f32 %v591_v10, %v335_v7 }
  0xf0   :  { %v197_v17 = vpop.f32.mrf.mxu0  ;;  %v229_v18 = vpop.f32.mrf.mxu1 }
  0xf1   :  { %v515_v19 = vpack.c.bf16 %v344_v13, %v343_v11  ;;  %v535_v20 = vpack.c.bf16 %v352_v14, %v351_v12  ;;  %v342_v21 = vmul.f32 %v285_v37, %v197_v17  ;;  %v350_v22 = vmul.f32 %v325_v51, %v229_v18 }
  0xf3   :  { %539 = vst [vmem:[#allocation2 + $0x18] sm:$0xff] %v515_v19   ;;  %543 = vst [vmem:[#allocation2 + $0x38] sm:$0xff] %v535_v20   ;;  %v510_v23 = vpack.c.bf16 %v342_v21, %v341_v15  ;;  %v530_v24 = vpack.c.bf16 %v350_v22, %v349_v16 }
  0xf5   :  { %538 = vst [vmem:[#allocation2 + $0x10] sm:$0xff] %v510_v23   ;;  %542 = vst [vmem:[#allocation2 + $0x30] sm:$0xff] %v530_v24  }
  0xf6   :  { %641 = shalt.err (!%p638_p4)
}
  0xf7   :  { %s654_s22 = smov 64   ;;  %s655_s1 = smov 4  }
  0xf8   :  { %444 = dma.vmem_to_hbm [thread:$0]  %s439_s2, 1024, %s778_s3, [#allocation3], %s654_s22, %s654_s22, %s655_s1  }
  0xf9   :  { %650 = dma.done.wait [#allocation3], 1024  }
  0xfa   :  { %651 = vsyncadd [#allocation3], 4294966272 }
  0xfb   :  { %448 = vsyncpa [#allocation3], 1 }

</bundles_post_ra>
